<compile_context>
chip_gen: v6e
topology: v6e:2x2x1
jax: 0.10.0
libtpu: 0.0.40
codegen_flags: <defaults>
</compile_context>

<pallas_src>
import jax
import jax.numpy as jnp
from jax.experimental import pallas as pl
from jax.experimental.pallas import tpu as pltpu


def _mlp2_relu_kernel(x_ref, w1_ref, b1_ref, w2_ref, b2_ref, o_ref):
    # Layer 1: Linear(D -> 32) + ReLU.  x arrives f32 straight from HBM (no
    # wrapper cast pass); cast to bf16 in-register for the MXU, accumulate f32.
    x_bf = x_ref[...].astype(jnp.bfloat16)
    h = jnp.dot(x_bf, w1_ref[...], preferred_element_type=jnp.float32)
    h = jnp.maximum(h + b1_ref[...], 0.0)
    # Layer 2: Linear(32 -> O) + ReLU.  K=32, N=O: a single MXU pass.
    y = jnp.dot(h.astype(w2_ref.dtype), w2_ref[...],
                preferred_element_type=jnp.float32)
    # Unpadded (TM, O) store: a few masked vst, but ~94% fewer HBM write bytes
    # than a 128-lane-padded output, and no post-kernel lane slice pass.
    o_ref[...] = jnp.maximum(y + b2_ref[...], 0.0).astype(o_ref.dtype)


def mlp2_relu(x, w1, b1, w2, b2, *, block_m=1024):
    """Fused Flatten -> Linear(D,32) -> ReLU -> Linear(32,O) -> ReLU.

    x:  (B, ...) float32 (flattened row-major, like nn.Flatten)
    w1: (D, 32)  float32   (transposed vs. nn.Linear.weight)
    b1: (32,)    float32
    w2: (32, O)  float32   (transposed vs. nn.Linear.weight)
    b2: (O,)     float32
    returns (B, O) float32

    block_m: max batch rows per grid step.  1024 is safe on every generation;
    2048 is fine on v6e (32 MiB scoped VMEM) for a small pipelining win.
    """
    B = x.shape[0]
    x_flat = x.reshape(B, -1)
    D = x_flat.shape[1]
    H = w1.shape[1]
    O = w2.shape[1]

    # --- batch tiling: multiple of 8, minimal padding, >=2 steps when possible
    block_m = max(8, (block_m // 8) * 8)              # enforce (8,128) rule
    two_way = max(8, ((pl.cdiv(B, 2) + 7) // 8) * 8)  # lets v7x use both TCs
    tile_cap = min(block_m, two_way)
    grid_m = pl.cdiv(B, tile_cap)
    TM = max(8, ((pl.cdiv(B, grid_m) + 7) // 8) * 8)  # minimal pad, mult of 8
    B_pad = grid_m * TM

    # --- wrapper-side prep: x stays f32 (no cast pass); pad only if needed ---
    x_p = x_flat
    if B_pad != B:
        x_p = jnp.pad(x_flat, ((0, B_pad - B), (0, 0)))
    w1_bf = w1.astype(jnp.bfloat16)                   # tiny, VMEM-resident
    w2_bf = w2.astype(jnp.bfloat16)
    b1_2d = b1.reshape(1, H).astype(jnp.float32)
    b2_2d = b2.reshape(1, O).astype(jnp.float32)

    cost = pl.CostEstimate(
        flops=2 * B_pad * D * H + 2 * B_pad * H * O,
        transcendentals=0,
        bytes_accessed=(x_p.size * 4 + w1_bf.size * 2 + w2_bf.size * 2
                        + b1_2d.size * 4 + b2_2d.size * 4
                        + B_pad * O * 4),
    )

    out = pl.pallas_call(
        _mlp2_relu_kernel,
        out_shape=jax.ShapeDtypeStruct((B_pad, O), jnp.float32),
        grid=(grid_m,),
        in_specs=[
            pl.BlockSpec((TM, D), lambda i: (i, 0)),   # x: streams per tile (f32)
            pl.BlockSpec((D, H), lambda i: (0, 0)),    # w1: resident
            pl.BlockSpec((1, H), lambda i: (0, 0)),    # b1: resident
            pl.BlockSpec((H, O), lambda i: (0, 0)),    # w2: resident
            pl.BlockSpec((1, O), lambda i: (0, 0)),    # b2: resident
        ],
        out_specs=pl.BlockSpec((TM, O), lambda i: (i, 0)),
        compiler_params=pltpu.CompilerParams(
            dimension_semantics=("parallel",)),
        cost_estimate=cost,
    )(x_p, w1_bf, b1_2d, w2_bf, b2_2d)

    # Drop batch padding only when it exists (no-op HBM pass otherwise).
    if B_pad != B:
        out = out[:B]
    return out


if __name__ == "__main__":
    # Shapes consistent with the module: x (B, C, H, W) = (2, 4, 16, 16)
    # -> input_dim = 4*16*16 = 1024, hidden = 32, output_dim = 10.
    B, C, Hs, Ws = 2, 4, 16, 16
    D = C * Hs * Ws
    HID = 32
    OUT = 10

    key = jax.random.PRNGKey(0)
    kx, kw1, kw2 = jax.random.split(key, 3)

    x = jax.random.normal(kx, (B, C, Hs, Ws), dtype=jnp.float32)

    # Deterministic parameter init (xavier-uniform weights, zero bias) —
    # values are arbitrary, only forward semantics matter.
    bound1 = (6.0 / (D + HID)) ** 0.5
    w1 = jax.random.uniform(kw1, (D, HID), jnp.float32, -bound1, bound1)
    b1 = jnp.zeros((HID,), jnp.float32)
    bound2 = (6.0 / (HID + OUT)) ** 0.5
    w2 = jax.random.uniform(kw2, (HID, OUT), jnp.float32, -bound2, bound2)
    b2 = jnp.zeros((OUT,), jnp.float32)

    out = mlp2_relu(x, w1, b1, w2, b2)
    out = jax.block_until_ready(out)

    # Reference with the same bf16-cast operands and f32 accumulation
    # (matches the kernel's MXU math; the bf16 weight/operand cast is an
    # intentional precision/perf tradeoff per the perf review).
    x_flat = x.reshape(B, D)
    xb = x_flat.astype(jnp.bfloat16).astype(jnp.float32)
    w1b = w1.astype(jnp.bfloat16).astype(jnp.float32)
    w2b = w2.astype(jnp.bfloat16).astype(jnp.float32)
    h_ref = jnp.maximum(xb @ w1b + b1, 0.0)
    hb = h_ref.astype(jnp.bfloat16).astype(jnp.float32)
    ref = jnp.maximum(hb @ w2b + b2, 0.0)

    assert out.shape == (B, OUT)
    assert jnp.allclose(out, ref, atol=2e-3, rtol=2e-3), (
        float(jnp.max(jnp.abs(out - ref))))

    print("KERNEL_OK")
</pallas_src>

<mosaic_0001>
module attributes {stable_mosaic.version = 11 : i64} {
  func.func @_mlp2_relu_kernel(%arg0: i32, %arg1: memref<8x1024xf32, #tpu.memory_space<vmem>>, %arg2: memref<1024x32xbf16, #tpu.memory_space<vmem>>, %arg3: memref<1x32xf32, #tpu.memory_space<vmem>>, %arg4: memref<32x10xbf16, #tpu.memory_space<vmem>>, %arg5: memref<1x10xf32, #tpu.memory_space<vmem>>, %arg6: memref<8x10xf32, #tpu.memory_space<vmem>>) attributes {dimension_semantics = [#tpu.dimension_semantics<parallel>], iteration_bounds = array<i64: 1>, scalar_prefetch = 0 : i64, scratch_operands = 0 : i64, tpu.core_type = #tpu.core_type<tc>, window_params = [{transform_indices = @transform_0, window_bounds = array<i64: 8, 1024>}, {pipeline_mode = #tpu.pipeline_mode<synchronous>, transform_indices = @transform_1, window_bounds = array<i64: 1024, 32>}, {pipeline_mode = #tpu.pipeline_mode<synchronous>, transform_indices = @transform_2, window_bounds = array<i64: 1, 32>}, {pipeline_mode = #tpu.pipeline_mode<synchronous>, transform_indices = @transform_3, window_bounds = array<i64: 32, 10>}, {pipeline_mode = #tpu.pipeline_mode<synchronous>, transform_indices = @transform_4, window_bounds = array<i64: 1, 10>}, {transform_indices = @transform_5, window_bounds = array<i64: 8, 10>}]} {
    %c0 = arith.constant 0 : index
    %c0_0 = arith.constant 0 : index
    %0 = vector.load %arg1[%c0, %c0_0] : memref<8x1024xf32, #tpu.memory_space<vmem>>, vector<8x1024xf32>
    %1 = arith.truncf %0 : vector<8x1024xf32> to vector<8x1024xbf16>
    %c0_1 = arith.constant 0 : index
    %c0_2 = arith.constant 0 : index
    %2 = vector.load %arg2[%c0_1, %c0_2] : memref<1024x32xbf16, #tpu.memory_space<vmem>>, vector<1024x32xbf16>
    %cst = arith.constant dense<0.000000e+00> : vector<8x32xf32>
    %3 = tpu.matmul %1, %2, %cst {dimension_numbers = #tpu.dot_dimension_numbers<[1], [0], [0], [1], [0, 0, 1, 1], [], []>} : vector<8x1024xbf16>, vector<1024x32xbf16>, vector<8x32xf32> -> vector<8x32xf32>
    %c0_3 = arith.constant 0 : index
    %c0_4 = arith.constant 0 : index
    %4 = vector.load %arg3[%c0_3, %c0_4] : memref<1x32xf32, #tpu.memory_space<vmem>>, vector<1x32xf32>
    %5 = vector.broadcast %4 : vector<1x32xf32> to vector<8x32xf32>
    %6 = arith.addf %3, %5 : vector<8x32xf32>
    %cst_5 = arith.constant 0.000000e+00 : f32
    %7 = vector.broadcast %cst_5 : f32 to vector<8x32xf32>
    %8 = arith.maximumf %6, %7 : vector<8x32xf32>
    %9 = arith.truncf %8 : vector<8x32xf32> to vector<8x32xbf16>
    %c0_6 = arith.constant 0 : index
    %c0_7 = arith.constant 0 : index
    %10 = vector.load %arg4[%c0_6, %c0_7] : memref<32x10xbf16, #tpu.memory_space<vmem>>, vector<32x10xbf16>
    %cst_8 = arith.constant dense<0.000000e+00> : vector<8x10xf32>
    %11 = tpu.matmul %9, %10, %cst_8 {dimension_numbers = #tpu.dot_dimension_numbers<[1], [0], [0], [1], [0, 0, 1, 1], [], []>} : vector<8x32xbf16>, vector<32x10xbf16>, vector<8x10xf32> -> vector<8x10xf32>
    %c0_9 = arith.constant 0 : index
    %c0_10 = arith.constant 0 : index
    %12 = vector.load %arg5[%c0_9, %c0_10] : memref<1x10xf32, #tpu.memory_space<vmem>>, vector<1x10xf32>
    %13 = vector.broadcast %12 : vector<1x10xf32> to vector<8x10xf32>
    %14 = arith.addf %11, %13 : vector<8x10xf32>
    %cst_11 = arith.constant 0.000000e+00 : f32
    %15 = vector.broadcast %cst_11 : f32 to vector<8x10xf32>
    %16 = arith.maximumf %14, %15 : vector<8x10xf32>
    %c0_12 = arith.constant 0 : index
    %c0_13 = arith.constant 0 : index
    %17 = vector.load %arg6[%c0_12, %c0_13] : memref<8x10xf32, #tpu.memory_space<vmem>>, vector<8x10xf32>
    tpu.vector_store %arg6[%c0_12, %c0_13], %16 {strides = array<i32>} : memref<8x10xf32, #tpu.memory_space<vmem>>, vector<8x10xf32>,
    return
  }
  func.func @transform_0(%arg0: i32) -> (i32, i32) {
    %c0_i32 = arith.constant 0 : i32
    %c0_i32_0 = arith.constant 0 : i32
    return %arg0, %c0_i32 : i32, i32
  }
  func.func @transform_1(%arg0: i32) -> (i32, i32) {
    %c0_i32 = arith.constant 0 : i32
    %c0_i32_0 = arith.constant 0 : i32
    %c0_i32_1 = arith.constant 0 : i32
    return %c0_i32, %c0_i32_0 : i32, i32
  }
  func.func @transform_2(%arg0: i32) -> (i32, i32) {
    %c0_i32 = arith.constant 0 : i32
    %c0_i32_0 = arith.constant 0 : i32
    %c0_i32_1 = arith.constant 0 : i32
    return %c0_i32, %c0_i32_0 : i32, i32
  }
  func.func @transform_3(%arg0: i32) -> (i32, i32) {
    %c0_i32 = arith.constant 0 : i32
    %c0_i32_0 = arith.constant 0 : i32
    %c0_i32_1 = arith.constant 0 : i32
    return %c0_i32, %c0_i32_0 : i32, i32
  }
  func.func @transform_4(%arg0: i32) -> (i32, i32) {
    %c0_i32 = arith.constant 0 : i32
    %c0_i32_0 = arith.constant 0 : i32
    %c0_i32_1 = arith.constant 0 : i32
    return %c0_i32, %c0_i32_0 : i32, i32
  }
  func.func @transform_5(%arg0: i32) -> (i32, i32) {
    %c0_i32 = arith.constant 0 : i32
    %c0_i32_0 = arith.constant 0 : i32
    return %arg0, %c0_i32 : i32, i32
  }
}

</mosaic_0001>

<bundles_post_ra>
// kernel: tpu_custom_call.1
= control target key start
LH: loop header
LB: loop body
LE: loop exit
PB: predicated region body
PF: predicated region fallthrough
CT: control target
= control target key end

     0   :  { %s1326_s0 = inlined_call_operand.vmem [shape: f32[8,1024], index: 0, kind: input, shape index: {}]   ;;  %s1327_s1 = inlined_call_operand.vmem [shape: bf16[1024,32], index: 1, kind: input, shape index: {}]   ;;  %s1328_s2 = inlined_call_operand.vmem [shape: f32[1,32], index: 2, kind: input, shape index: {}]   ;;  %s1329_s3 = inlined_call_operand.vmem [shape: bf16[32,10], index: 3, kind: input, shape index: {}]   ;;  %s1330_s4 = inlined_call_operand.vmem [shape: f32[1,10], index: 4, kind: input, shape index: {}]   ;;  %s1331_s5 = inlined_call_operand.hbm [shape: f32[8,10], index: 5, kind: output, shape index: {}]  }
   0x1   :  { %v974_v0 = vld [vmem:[%s1327_s1 + $0x78] sm:$0xff]   ;;  %v978_v4 = vld [vmem:[%s1327_s1 + $0x70] sm:$0xff]   ;;  %v982_v8 = vld [vmem:[%s1327_s1 + $0x68] sm:$0xff]  }
   0x2   :  { %v975_v1 = vld [vmem:[%s1327_s1 + $0xf8] sm:$0xff]   ;;  %872 = vmatprep.subr.bf16.mxu0 %v974_v0  ;;  %v979_v5 = vld [vmem:[%s1327_s1 + $0xf0] sm:$0xff]   ;;  %v983_v9 = vld [vmem:[%s1327_s1 + $0xe8] sm:$0xff]  }
   0x3   :  { %v976_v2 = vld [vmem:[%s1327_s1 + $0x38] sm:$0xff]   ;;  %894 = vmatprep.subr.bf16.mxu1 %v975_v1  ;;  %v980_v6 = vld [vmem:[%s1327_s1 + $0x30] sm:$0xff]   ;;  %v984_v10 = vld [vmem:[%s1327_s1 + $0x28] sm:$0xff]  }
   0x4   :  { %v977_v3 = vld [vmem:[%s1327_s1 + $0xb8] sm:$0xff]   ;;  %873 = vmatpush3.bf16.msra.mxu0 %v976_v2  ;;  %v981_v7 = vld [vmem:[%s1327_s1 + $0xb0] sm:$0xff]   ;;  %v985_v11 = vld [vmem:[%s1327_s1 + $0xa8] sm:$0xff]  }
   0x5   :  { %895 = vmatpush3.bf16.msra.mxu1 %v977_v3  ;;  %874 = vmatprep.subr.bf16.mxu0 %v978_v4  ;;  %v986_v12 = vld [vmem:[%s1327_s1 + $0x60] sm:$0xff]   ;;  %v990_v16 = vld [vmem:[%s1327_s1 + $0x58] sm:$0xff]   ;;  %v994_v20 = vld [vmem:[%s1327_s1 + $0x50] sm:$0xff]  }
   0x6   :  { %896 = vmatprep.subr.bf16.mxu1 %v979_v5  ;;  %v987_v13 = vld [vmem:[%s1327_s1 + $0xe0] sm:$0xff]   ;;  %v991_v17 = vld [vmem:[%s1327_s1 + $0xd8] sm:$0xff]   ;;  %v995_v21 = vld [vmem:[%s1327_s1 + $0xd0] sm:$0xff]  }
   0x7   :  { %v988_v14 = vld [vmem:[%s1327_s1 + $0x20] sm:$0xff]   ;;  %v992_v18 = vld [vmem:[%s1327_s1 + $0x18] sm:$0xff]   ;;  %v996_v22 = vld [vmem:[%s1327_s1 + $0x10] sm:$0xff]  }
   0x8   :  { %875 = vmatpush3.bf16.msra.mxu0 %v980_v6  ;;  %v989_v15 = vld [vmem:[%s1327_s1 + $0xa0] sm:$0xff]   ;;  %v993_v19 = vld [vmem:[%s1327_s1 + $0x98] sm:$0xff]   ;;  %v997_v23 = vld [vmem:[%s1327_s1 + $0x90] sm:$0xff]  }
   0x9   :  { %897 = vmatpush3.bf16.msra.mxu1 %v981_v7  ;;  %876 = vmatprep.subr.bf16.mxu0 %v982_v8  ;;  %v998_v24 = vld [vmem:[%s1327_s1 + $0x48] sm:$0xff]   ;;  %v1002_v28 = vld [vmem:[%s1327_s1 + $0x40] sm:$0xff]   ;;  %v25_v33 = vld [vmem:[%s1326_s0 + $0x18] sm:$0xff] }
   0xa   :  { %898 = vmatprep.subr.bf16.mxu1 %v983_v9  ;;  %v999_v25 = vld [vmem:[%s1327_s1 + $0xc8] sm:$0xff]   ;;  %v1003_v29 = vld [vmem:[%s1327_s1 + $0xc0] sm:$0xff]   ;;  %v33_v36 = vpack.c.bf16 %v25_v33, %v25_v33  ;;  %v24_v38 = vld [vmem:[%s1326_s0 + $0x10] sm:$0xff] }
   0xb   :  { %v1000_v26 = vld [vmem:[%s1327_s1 + $0x8] sm:$0xff]   ;;  %v1004_v30 = vld [vmem:[%s1327_s1] sm:$0xff]   ;;  %v32_v39 = vpack.c.bf16 %v24_v38, %v24_v38  ;;  %v1006_v40 = vld [vmem:[%s1327_s1 + $0x178] sm:$0xff]  }
   0xc   :  { %877 = vmatpush3.bf16.msra.mxu0 %v984_v10  ;;  %v1001_v27 = vld [vmem:[%s1327_s1 + $0x88] sm:$0xff]   ;;  %v1005_v31 = vld [vmem:[%s1327_s1 + $0x80] sm:$0xff]   ;;  %629 = vmatprep.mubr.bf16.mxu1 %v33_v36  ;;  %v1007_v41 = vld [vmem:[%s1327_s1 + $0x1f8] sm:$0xff]  }
   0xd   :  { %899 = vmatpush3.bf16.msra.mxu1 %v985_v11  ;;  %878 = vmatprep.subr.bf16.mxu0 %v986_v12  ;;  %v23_v32 = vld [vmem:[%s1326_s0 + $0x8] sm:$0xff]  ;;  %v22_v34 = vld [vmem:[%s1326_s0] sm:$0xff]  ;;  %v1008_v42 = vld [vmem:[%s1327_s1 + $0x138] sm:$0xff]  }
   0xe   :  { %900 = vmatprep.subr.bf16.mxu1 %v987_v13  ;;  %v31_v35 = vpack.c.bf16 %v23_v32, %v23_v32  ;;  %v30_v37 = vpack.c.bf16 %v22_v34, %v22_v34  ;;  %v1009_v43 = vld [vmem:[%s1327_s1 + $0x1b8] sm:$0xff]   ;;  %v1010_v44 = vld [vmem:[%s1327_s1 + $0x170] sm:$0xff]   ;;  %v1014_v48 = vld [vmem:[%s1327_s1 + $0x168] sm:$0xff]  }
   0xf   :  { %v1011_v45 = vld [vmem:[%s1327_s1 + $0x1f0] sm:$0xff]   ;;  %v1015_v49 = vld [vmem:[%s1327_s1 + $0x1e8] sm:$0xff]   ;;  %v1018_v52 = vld [vmem:[%s1327_s1 + $0x160] sm:$0xff]  }
  0x10   :  { %879 = vmatpush3.bf16.msra.mxu0 %v988_v14  ;;  %589 = vmatprep.mubr.bf16.mxu0 %v31_v35  ;;  %v1012_v46 = vld [vmem:[%s1327_s1 + $0x130] sm:$0xff]   ;;  %v1016_v50 = vld [vmem:[%s1327_s1 + $0x128] sm:$0xff]   ;;  %v1019_v53 = vld [vmem:[%s1327_s1 + $0x1e0] sm:$0xff]  }
  0x11   :  { %901 = vmatpush3.bf16.msra.mxu1 %v989_v15  ;;  %880 = vmatprep.subr.bf16.mxu0 %v990_v16  ;;  %v1013_v47 = vld [vmem:[%s1327_s1 + $0x1b0] sm:$0xff]   ;;  %v1017_v51 = vld [vmem:[%s1327_s1 + $0x1a8] sm:$0xff]   ;;  %v1020_v54 = vld [vmem:[%s1327_s1 + $0x120] sm:$0xff]  }
  0x12   :  { %902 = vmatprep.subr.bf16.mxu1 %v991_v17  ;;  %v1021_v55 = vld [vmem:[%s1327_s1 + $0x1a0] sm:$0xff]   ;;  %v1022_v56 = vld [vmem:[%s1327_s1 + $0x158] sm:$0xff]   ;;  %v1026_v60 = vld [vmem:[%s1327_s1 + $0x150] sm:$0xff]  }
  0x13   :  { %v1023_v57 = vld [vmem:[%s1327_s1 + $0x1d8] sm:$0xff]   ;;  %v1027_v61 = vld [vmem:[%s1327_s1 + $0x1d0] sm:$0xff]   ;;  %v1030_v0 = vld [vmem:[%s1327_s1 + $0x148] sm:$0xff]  }
  0x14   :  { %881 = vmatpush3.bf16.msra.mxu0 %v992_v18  ;;  %v1024_v58 = vld [vmem:[%s1327_s1 + $0x118] sm:$0xff]   ;;  %v1028_v62 = vld [vmem:[%s1327_s1 + $0x110] sm:$0xff]   ;;  %v1031_v1 = vld [vmem:[%s1327_s1 + $0x1c8] sm:$0xff]  }
  0x15   :  { %903 = vmatpush3.bf16.msra.mxu1 %v993_v19  ;;  %882 = vmatprep.subr.bf16.mxu0 %v994_v20  ;;  %v1025_v59 = vld [vmem:[%s1327_s1 + $0x198] sm:$0xff]   ;;  %v1029_v63 = vld [vmem:[%s1327_s1 + $0x190] sm:$0xff]   ;;  %v1032_v2 = vld [vmem:[%s1327_s1 + $0x108] sm:$0xff]  }
  0x16   :  { %904 = vmatprep.subr.bf16.mxu1 %v995_v21  ;;  %v1033_v3 = vld [vmem:[%s1327_s1 + $0x188] sm:$0xff]   ;;  %v1034_v4 = vld [vmem:[%s1327_s1 + $0x140] sm:$0xff]   ;;  %v29_v9 = vld [vmem:[%s1326_s0 + $0x38] sm:$0xff] }
  0x17   :  { %v1035_v5 = vld [vmem:[%s1327_s1 + $0x1c0] sm:$0xff]   ;;  %v27_v8 = vld [vmem:[%s1326_s0 + $0x28] sm:$0xff]  ;;  %v37_v11 = vpack.c.bf16 %v29_v9, %v29_v9  ;;  %v28_v13 = vld [vmem:[%s1326_s0 + $0x30] sm:$0xff] }
  0x18   :  { %883 = vmatpush3.bf16.msra.mxu0 %v996_v22  ;;  %v1036_v6 = vld [vmem:[%s1327_s1 + $0x100] sm:$0xff]   ;;  %v35_v10 = vpack.c.bf16 %v27_v8, %v27_v8  ;;  %v36_v15 = vpack.c.bf16 %v28_v13, %v28_v13 }
  0x19   :  { %905 = vmatpush3.bf16.msra.mxu1 %v997_v23  ;;  %884 = vmatprep.subr.bf16.mxu0 %v998_v24  ;;  %v1037_v7 = vld [vmem:[%s1327_s1 + $0x180] sm:$0xff]  }
  0x1a   :  { %906 = vmatprep.subr.bf16.mxu1 %v999_v25  ;;  %v26_v12 = vld [vmem:[%s1326_s0 + $0x20] sm:$0xff] }
  0x1b   :  { %v34_v14 = vpack.c.bf16 %v26_v12, %v26_v12 }
  0x1c   :  { %885 = vmatpush3.bf16.msra.mxu0 %v1000_v26 }
  0x1d   :  { %907 = vmatpush3.bf16.msra.mxu1 %v1001_v27  ;;  %886 = vmatprep.subr.bf16.mxu0 %v1002_v28 }
  0x1e   :  { %908 = vmatprep.subr.bf16.mxu1 %v1003_v29 }
  0x20   :  { %887 = vmatpush3.bf16.msra.mxu0 %v1004_v30 }
  0x21   :  { %909 = vmatpush3.bf16.msra.mxu1 %v1005_v31  ;;  %916 = vmatprep.subr.bf16.mxu0 %v1006_v40 }
  0x22   :  { %938 = vmatprep.subr.bf16.mxu1 %v1007_v41 }
  0x23   :  { %590 = vmatmul.mubr.bf16.vlgmr.msra.gmra.mxu0 %v30_v37 }
  0x24   :  { %630 = vmatmul.mubr.bf16.vlgmr.msra.gmra.mxu1 %v32_v39  ;;  %917 = vmatpush3.bf16.msra.mxu0 %v1008_v42 }
  0x25   :  { %939 = vmatpush3.bf16.msra.mxu1 %v1009_v43  ;;  %918 = vmatprep.subr.bf16.mxu0 %v1010_v44 }
  0x26   :  { %940 = vmatprep.subr.bf16.mxu1 %v1011_v45  ;;  %669 = vmatprep.mubr.bf16.mxu0 %v35_v10 }
  0x27   :  { %709 = vmatprep.mubr.bf16.mxu1 %v37_v11 }
  0x28   :  { %919 = vmatpush3.bf16.msra.mxu0 %v1012_v46 }
  0x29   :  { %941 = vmatpush3.bf16.msra.mxu1 %v1013_v47  ;;  %920 = vmatprep.subr.bf16.mxu0 %v1014_v48 }
  0x2a   :  { %942 = vmatprep.subr.bf16.mxu1 %v1015_v49 }
  0x2c   :  { %921 = vmatpush3.bf16.msra.mxu0 %v1016_v50 }
  0x2d   :  { %943 = vmatpush3.bf16.msra.mxu1 %v1017_v51  ;;  %922 = vmatprep.subr.bf16.mxu0 %v1018_v52 }
  0x2e   :  { %944 = vmatprep.subr.bf16.mxu1 %v1019_v53 }
  0x30   :  { %923 = vmatpush3.bf16.msra.mxu0 %v1020_v54 }
  0x31   :  { %945 = vmatpush3.bf16.msra.mxu1 %v1021_v55  ;;  %924 = vmatprep.subr.bf16.mxu0 %v1022_v56 }
  0x32   :  { %946 = vmatprep.subr.bf16.mxu1 %v1023_v57 }
  0x34   :  { %925 = vmatpush3.bf16.msra.mxu0 %v1024_v58 }
  0x35   :  { %947 = vmatpush3.bf16.msra.mxu1 %v1025_v59  ;;  %926 = vmatprep.subr.bf16.mxu0 %v1026_v60 }
  0x36   :  { %948 = vmatprep.subr.bf16.mxu1 %v1027_v61 }
  0x38   :  { %927 = vmatpush3.bf16.msra.mxu0 %v1028_v62 }
  0x39   :  { %949 = vmatpush3.bf16.msra.mxu1 %v1029_v63  ;;  %928 = vmatprep.subr.bf16.mxu0 %v1030_v0 }
  0x3a   :  { %950 = vmatprep.subr.bf16.mxu1 %v1031_v1 }
  0x3c   :  { %929 = vmatpush3.bf16.msra.mxu0 %v1032_v2 }
  0x3d   :  { %951 = vmatpush3.bf16.msra.mxu1 %v1033_v3  ;;  %930 = vmatprep.subr.bf16.mxu0 %v1034_v4 }
  0x3e   :  { %952 = vmatprep.subr.bf16.mxu1 %v1035_v5 }
  0x40   :  { %931 = vmatpush3.bf16.msra.mxu0 %v1036_v6 }
  0x41   :  { %953 = vmatpush3.bf16.msra.mxu1 %v1037_v7 }
  0x42   :  { %10 = vsyncpa [#allocation3], 0  ;;  %v1038_v16 = vld [vmem:[%s1329_s3 + $0x8] sm:$0xff]   ;;  %v1062_v17 = vmov 0.0   ;;  %v1039_v18 = vld [vmem:[%s1329_s3] sm:$0xff]   ;;  %vm1063_vm0 = vmmov 0  }
  0x43   :  { %670 = vmatmul.mubr.bf16.vlgmr.msra.gmra.mxu0 %v34_v14  ;;  %963 = vmatprep.subr.bf16.mxu0 %v1062_v17  ;;  %v803_v28 = vld [vmem:[%s1328_s2] ss:$0 sm:$0xff]  ;;  %vm742_vm1 = vcmask 261120   ;;  %s1064_s16 = smov [#allocation2]   ;;  %vm787_vm2 = vcmask 80896  }
  0x44   :  { %710 = vmatmul.mubr.bf16.vlgmr.msra.gmra.mxu1 %v36_v15  ;;  %964 = vmatpush3.bf16.msra.mxu0 %v1038_v16  ;;  %v868_v46 = vld [vmem:[%s1330_s4] ss:$0 sm:$0xff]  ;;  %s795_s17 = sshll.u32 %s1064_s16, 4  ;;  %s796_s17 = int_to_ptr.vmem [resolvable:$true] %s795_s17 }
  0x45   :  { %965 = vmatprep.subr.bf16.mxu0 %v1062_v17  ;;  %967 = vmatprep.mubr.msk.bf16.mxu0 %vm1063_vm0, %v1062_v17  ;;  %s1040_s18 = scalar_lea.vmem %s796_s17, 128  ;;  %p1045_p1 = scmp.lt.s32.totalorder %s796_s17, %s796_s17 }
  0x46   :  { %p1041_p0 = scmp.ne.s32.totalorder %s796_s17, %s1040_s18  ;;  %p1046_p2 = scmp.lt.s32.totalorder %s1040_s18, %s1040_s18 }
  0x48   :  { %966 = vmatpush3.bf16.msra.mxu0 %v1039_v18  ;;  %p1047_p3 = por %p1046_p2, %p1045_p1 }
  0x4a   :  { %p1048_p4 = pnand %p1047_p3, %p1041_p0 }
  0xe3   :  { %v888_v19 = vpop.f32.mrf.mxu0 }
  0xe4   :  { %v910_v20 = vpop.f32.mrf.mxu1 }
  0xe5   :  { %v889_v21 = vpop.f32.mrf.mxu0 }
  0xe6   :  { %v911_v22 = vpop.f32.mrf.mxu1  ;;  %v890_v27 = vadd.f32 %v889_v21, %v888_v19 }
  0xe7   :  { %v891_v23 = vpop.f32.mrf.mxu0  ;;  %v912_v30 = vadd.f32 %v911_v22, %v910_v20 }
  0xe8   :  { %v913_v24 = vpop.f32.mrf.mxu1  ;;  %v592_v29 = vadd.f32 %v890_v27, %v803_v28 }
  0xe9   :  { %v892_v25 = vpop.f32.mrf.mxu0 }
  0xea   :  { %v914_v26 = vpop.f32.mrf.mxu1  ;;  %v632_v34 = vadd.f32 %v912_v30, %v592_v29 }
 0x103   :  { %v932_v31 = vpop.f32.mrf.mxu0 }
 0x104   :  { %v954_v32 = vpop.f32.mrf.mxu1 }
 0x105   :  { %v933_v33 = vpop.f32.mrf.mxu0 }
 0x106   :  { %v934_v35 = vadd.f32 %v933_v33, %v932_v31  ;;  %v955_v36 = vpop.f32.mrf.mxu1 }
 0x107   :  { %v935_v37 = vpop.f32.mrf.mxu0  ;;  %v956_v39 = vadd.f32 %v955_v36, %v954_v32 }
 0x108   :  { %v672_v38 = vadd.f32 %v934_v35, %v632_v34  ;;  %v957_v40 = vpop.f32.mrf.mxu1 }
 0x109   :  { %v936_v41 = vpop.f32.mrf.mxu0 }
 0x10a   :  { %v712_v42 = vadd.f32 %v956_v39, %v672_v38  ;;  %v958_v43 = vpop.f32.mrf.mxu1 }
 0x10c   :  { %v717_v44 = vmax.f32 %v712_v42, 0.0 }
 0x10e   :  { %v718_v45 = vpack.c.bf16 %v717_v44, %v717_v44 }
 0x110   :  { %968 = vmatmul.mubr.msk.bf16.vlgmr.msra.gmra.mxu0 %vm742_vm1, %v718_v45 }
 0x1d0   :  { %v780_v47 = vpop.f32.mrf.mxu0 }
 0x1d1   :  { %v781_v48 = vadd.f32 %v868_v46, %v780_v47 }
 0x1d2   :  { %v969_v49 = vpop.f32.mrf.mxu0 }
 0x1d3   :  { %v786_v50 = vmax.f32 %v781_v48, 0.0 }
 0x1d4   :  { %v783_v51 = vpop.f32.mrf.mxu0 }
 0x1d5   :  { %788 = vst.msk [vmem:[#allocation2] sm:$0xff] %vm787_vm2, %v786_v50 }
 0x1d6   :  { %v970_v52 = vpop.f32.mrf.mxu0 }
 0x1d7   :  { %1051 = shalt.err (!%p1048_p4)
}
 0x1d8   :  { %798 = dma.vmem_to_hbm [thread:$0]  %s796_s17, 128, %s1331_s5, [#allocation3]  }
 0x1d9   :  { %1060 = dma.done.wait [#allocation3], 128  }
 0x1da   :  { %1061 = vsyncadd [#allocation3], 4294967168 }
 0x1db   :  { %802 = vsyncpa [#allocation3], 1 }

</bundles_post_ra>
